<compile_context>
chip_gen: v7x
topology: tpu7x:2x2x1
jax: 0.10.0
libtpu: 0.0.40
codegen_flags: <defaults>
</compile_context>

<pallas_src>
import math

import jax
import jax.numpy as jnp
from jax import lax
from jax.experimental import pallas as pl
from jax.experimental.pallas import tpu as pltpu


def _position_cluster1_kernel(inv_t_ref, pc_i_ref, pc_j_ref, rowsq_ref, colsq_ref,
                              l_ref, pos_ref, neg_ref, nei_ref, colsum_ref):
    i = pl.program_id(0)            # row-block index (outer grid axis)
    j = pl.program_id(1)            # column-block index (inner, fastest axis)
    ni = pl.num_programs(0)
    nj = pl.num_programs(1)

    # ---- init resident accumulators on the first grid step -------------------
    @pl.when(jnp.logical_and(i == 0, j == 0))
    def _init():
        pos_ref[...] = jnp.zeros_like(pos_ref)
        neg_ref[...] = jnp.zeros_like(neg_ref)
        nei_ref[...] = jnp.zeros_like(nei_ref)
        colsum_ref[...] = jnp.zeros_like(colsum_ref)

    pc_i = pc_i_ref[...]            # (TI, C) float32

    # Running column sum of Position_cluster for ne_i: once per row block only.
    @pl.when(j == 0)
    def _accumulate_colsum():
        colsum_ref[...] += jnp.sum(pc_i, axis=0, keepdims=True)     # (1, C)

    # ---- Gaussian_matrix tile: euclidean_distances(PC)[tile] / temperature ---
    #   d2[a, b] = ||x_a||^2 + ||x_b||^2 - 2 <x_a, x_b>   (Gram matrix on MXU)
    gram = lax.dot_general(pc_i, pc_j_ref[...], (((1,), (1,)), ((), ())),
                           preferred_element_type=jnp.float32)       # (TI, TJ)
    d2 = jnp.maximum(rowsq_ref[...] + colsq_ref[...] - 2.0 * gram, 0.0)
    g = jnp.sqrt(d2) * inv_t_ref[...]        # EUP sqrt; multiply by 1/temperature

    # Zero the global diagonal (also fixes gram_ii vs norm rounding mismatch).
    ti, tj = g.shape
    gi = i * ti + lax.broadcasted_iota(jnp.int32, (ti, tj), 0)
    gj = j * tj + lax.broadcasted_iota(jnp.int32, (ti, tj), 1)
    g = jnp.where(gi == gj, 0.0, g)

    # ---- masked reductions without materializing pos/neg masks ---------------
    # TODO(synk): pos_neg_mask() is not defined in the source file; we use the
    # standard contrastive convention pos_mask = offdiag*L, neg_mask =
    # offdiag*(1-L) with a binary {0,1} L.
    lf = l_ref[...].astype(jnp.float32)                    # int8 -> f32 post-DMA
    gl_sum = jnp.sum(g * lf, keepdims=True)                # (1, 1)
    pos_ref[...] += gl_sum                                 # sum(pos_mask * G * L)
    neg_ref[...] += jnp.sum(g, keepdims=True) - gl_sum     # sum(neg_mask * G)

    # ---- finalize ne_i = log(C) + sum(p * log p) on the last grid step --------
    @pl.when(jnp.logical_and(i == ni - 1, j == nj - 1))
    def _finalize():
        cs = colsum_ref[...]                               # (1, C)
        p = cs / jnp.sum(cs, keepdims=True)
        safe_p = jnp.where(p > 0.0, p, 1.0)                # guard 0 * log(0)
        plogp = jnp.where(p > 0.0, p * jnp.log(safe_p), 0.0)
        nei_ref[...] = math.log(cs.shape[1]) + jnp.sum(plogp, keepdims=True)


def _pick_tile(n, candidates):
    for t in candidates:
        if t <= n and n % t == 0:
            return t
    return n        # fall back to a single block along this axis (small / odd N)


def position_cluster1_sums(position_cluster, L, temperature):
    """Pallas kernel: returns (sum(pos_mask*G*L), sum(neg_mask*G), ne_i)."""
    pc = jnp.asarray(position_cluster, dtype=jnp.float32)
    n, c = pc.shape
    assert L.shape == (n, n), "L must be (N, N) with N = Position_cluster.shape[0]"

    # {0,1} similarity mask as int8: 4x less HBM traffic on the dominant N*N read.
    l_i8 = jnp.asarray(L).astype(jnp.int8)

    # Squared row norms computed once, streamed as (N,1) / (1,N) block slices.
    sq = jnp.sum(pc * pc, axis=1)
    row_sq = sq[:, None]                      # (N, 1)
    col_sq = sq[None, :]                      # (1, N)

    # 1/temperature as a runtime input: no recompile when it changes; the kernel
    # multiplies instead of dividing.
    inv_t = jnp.full((1, 1), 1.0 / float(temperature), dtype=jnp.float32)

    # Tile sizes: sublane tile a multiple of 32 (int8 L tiling), lane tile a
    # multiple of 128; fall back to the full dimension for small / odd N.
    # 256x512 caps keep the per-step working set (~2 MiB) far below the scoped
    # VMEM limit on every generation (v5e 16 MiB default ... v7x 64 MiB).
    ti = _pick_tile(n, (256, 128, 64, 32))
    tj = _pick_tile(n, (512, 256, 128))
    grid = (n // ti, n // tj)

    out11 = jax.ShapeDtypeStruct((1, 1), jnp.float32)
    pos, neg, nei = pl.pallas_call(
        _position_cluster1_kernel,
        out_shape=(out11, out11, out11),
        grid_spec=pltpu.PrefetchScalarGridSpec(
            num_scalar_prefetch=0,
            grid=grid,
            in_specs=[
                pl.BlockSpec((1, 1), lambda i, j: (0, 0)),       # 1 / temperature
                pl.BlockSpec((ti, c), lambda i, j: (i, 0)),      # PC row block
                pl.BlockSpec((tj, c), lambda i, j: (j, 0)),      # PC column block
                pl.BlockSpec((ti, 1), lambda i, j: (i, 0)),      # ||x_i||^2 slice
                pl.BlockSpec((1, tj), lambda i, j: (0, j)),      # ||x_j||^2 slice
                pl.BlockSpec((ti, tj), lambda i, j: (i, j)),     # L tile (int8)
            ],
            out_specs=(
                pl.BlockSpec((1, 1), lambda i, j: (0, 0)),       # pos accumulator
                pl.BlockSpec((1, 1), lambda i, j: (0, 0)),       # neg accumulator
                pl.BlockSpec((1, 1), lambda i, j: (0, 0)),       # ne_i
            ),
            scratch_shapes=[
                pltpu.VMEM((1, c), jnp.float32),                 # running column sum
            ],
        ),
        compiler_params=pltpu.CompilerParams(
            # Outputs accumulate across BOTH grid axes, so both must be
            # "arbitrary".  TODO(synk): per-row-block partial outputs would let
            # axis 0 be "parallel" to use v7x's two TensorCores.
            dimension_semantics=("arbitrary", "arbitrary"),
            vmem_limit_bytes=32 * 1024 * 1024,
        ),
    )(inv_t, pc, pc, row_sq, col_sq, l_i8)
    return pos[0, 0], neg[0, 0], nei[0, 0]


def position_cluster1_loss(position_cluster, L, temperature):
    pos_sum, neg_sum, ne_i = position_cluster1_sums(position_cluster, L, temperature)
    # Final scalar combination exactly as in the PyTorch reference.
    pos_sim_value = -pos_sum * 10.0
    neg_sim_value = neg_sum
    loss = -jnp.log(pos_sim_value / neg_sim_value)
    return loss + ne_i


if __name__ == "__main__":
    temperature = 0.5
    key = jax.random.PRNGKey(0)
    k1, k2, k3, k4 = jax.random.split(key, 4)

    # ---- small shapes consistent with the module: N samples x C clusters ------
    N0, C0 = 16, 8
    pc0 = jax.nn.softmax(jax.random.normal(k1, (N0, C0), dtype=jnp.float32), axis=1)
    L0 = (jax.random.uniform(k2, (N0, N0), dtype=jnp.float32) > 0.5).astype(jnp.float32)
    loss0 = position_cluster1_loss(pc0, L0, temperature)
    jax.block_until_ready(loss0)
    # NOTE: like the PyTorch reference, -log(pos/neg) may be non-finite because
    # pos_sim_value = -10 * sum(...) is negative; the kernel reproduces the
    # reference reductions, the final log behaviour is inherited.

    # ---- larger case exercising the tiled grid + accumulators ------------------
    N1, C1 = 1024, 16
    pc1 = jax.nn.softmax(jax.random.normal(k3, (N1, C1), dtype=jnp.float32), axis=1)
    L1 = (jax.random.uniform(k4, (N1, N1), dtype=jnp.float32) > 0.5).astype(jnp.float32)
    pos, neg, nei = position_cluster1_sums(pc1, L1, temperature)
    jax.block_until_ready((pos, neg, nei))

    # Pure-JAX reference for the three reductions.
    d2 = jnp.sum((pc1[:, None, :] - pc1[None, :, :]) ** 2, axis=-1)
    g = jnp.sqrt(jnp.maximum(d2, 0.0)) / temperature
    g = g * (1.0 - jnp.eye(N1, dtype=jnp.float32))
    pos_r = jnp.sum(g * L1)
    neg_r = jnp.sum(g) - pos_r
    p = jnp.sum(pc1, axis=0)
    p = p / jnp.sum(p)
    nei_r = math.log(C1) + jnp.sum(p * jnp.log(p))

    def _close(a, b, rtol=2e-2, atol=1e-3):
        return bool(jnp.abs(a - b) <= rtol * jnp.abs(b) + atol)

    assert _close(pos, pos_r), (float(pos), float(pos_r))
    assert _close(neg, neg_r), (float(neg), float(neg_r))
    assert _close(nei, nei_r), (float(nei), float(nei_r))

    print("KERNEL_OK")
</pallas_src>

<mosaic_0001>
module attributes {stable_mosaic.version = 11 : i64} {
  func.func @_position_cluster1_kernel(%arg0: i32, %arg1: i32, %arg2: memref<1x1xf32, #tpu.memory_space<vmem>>, %arg3: memref<16x8xf32, #tpu.memory_space<vmem>>, %arg4: memref<16x8xf32, #tpu.memory_space<vmem>>, %arg5: memref<16x1xf32, #tpu.memory_space<vmem>>, %arg6: memref<1x16xf32, #tpu.memory_space<vmem>>, %arg7: memref<16x16xi8, #tpu.memory_space<vmem>>, %arg8: memref<1x1xf32, #tpu.memory_space<vmem>>, %arg9: memref<1x1xf32, #tpu.memory_space<vmem>>, %arg10: memref<1x1xf32, #tpu.memory_space<vmem>>, %arg11: memref<1x8xf32, #tpu.memory_space<vmem>>) attributes {dimension_semantics = [#tpu.dimension_semantics<arbitrary>, #tpu.dimension_semantics<arbitrary>], iteration_bounds = array<i64: 1, 1>, scalar_prefetch = 0 : i64, scratch_operands = 1 : i64, tpu.core_type = #tpu.core_type<tc>, window_params = [{pipeline_mode = #tpu.pipeline_mode<synchronous>, transform_indices = @transform_0, window_bounds = array<i64: 1, 1>}, {transform_indices = @transform_1, window_bounds = array<i64: 16, 8>}, {transform_indices = @transform_2, window_bounds = array<i64: 16, 8>}, {transform_indices = @transform_3, window_bounds = array<i64: 16, 1>}, {transform_indices = @transform_4, window_bounds = array<i64: 1, 16>}, {transform_indices = @transform_5, window_bounds = array<i64: 16, 16>}, {pipeline_mode = #tpu.pipeline_mode<synchronous>, transform_indices = @transform_6, window_bounds = array<i64: 1, 1>}, {pipeline_mode = #tpu.pipeline_mode<synchronous>, transform_indices = @transform_7, window_bounds = array<i64: 1, 1>}, {pipeline_mode = #tpu.pipeline_mode<synchronous>, transform_indices = @transform_8, window_bounds = array<i64: 1, 1>}]} {
    %c0_i32 = arith.constant 0 : i32
    %0 = arith.cmpi eq, %arg0, %c0_i32 : i32
    %c0_i32_0 = arith.constant 0 : i32
    %1 = arith.cmpi eq, %arg1, %c0_i32_0 : i32
    %2 = arith.andi %0, %1 : i1
    %3 = arith.extui %2 : i1 to i32
    %c0_i32_1 = arith.constant 0 : i32
    %4 = arith.cmpi ne, %3, %c0_i32_1 : i32
    scf.if %4 {
      %cst_32 = arith.constant 0.000000e+00 : f32
      %61 = vector.broadcast %cst_32 : f32 to vector<1x1xf32>
      %c0_33 = arith.constant 0 : index
      %c0_34 = arith.constant 0 : index
      %62 = vector.load %arg8[%c0_33, %c0_34] : memref<1x1xf32, #tpu.memory_space<vmem>>, vector<1x1xf32>
      tpu.vector_store %arg8[%c0_33, %c0_34], %61 {strides = array<i32>} : memref<1x1xf32, #tpu.memory_space<vmem>>, vector<1x1xf32>,
      %cst_35 = arith.constant 0.000000e+00 : f32
      %63 = vector.broadcast %cst_35 : f32 to vector<1x1xf32>
      %c0_36 = arith.constant 0 : index
      %c0_37 = arith.constant 0 : index
      %64 = vector.load %arg9[%c0_36, %c0_37] : memref<1x1xf32, #tpu.memory_space<vmem>>, vector<1x1xf32>
      tpu.vector_store %arg9[%c0_36, %c0_37], %63 {strides = array<i32>} : memref<1x1xf32, #tpu.memory_space<vmem>>, vector<1x1xf32>,
      %cst_38 = arith.constant 0.000000e+00 : f32
      %65 = vector.broadcast %cst_38 : f32 to vector<1x1xf32>
      %c0_39 = arith.constant 0 : index
      %c0_40 = arith.constant 0 : index
      %66 = vector.load %arg10[%c0_39, %c0_40] : memref<1x1xf32, #tpu.memory_space<vmem>>, vector<1x1xf32>
      tpu.vector_store %arg10[%c0_39, %c0_40], %65 {strides = array<i32>} : memref<1x1xf32, #tpu.memory_space<vmem>>, vector<1x1xf32>,
      %cst_41 = arith.constant 0.000000e+00 : f32
      %67 = vector.broadcast %cst_41 : f32 to vector<1x8xf32>
      %c0_42 = arith.constant 0 : index
      %c0_43 = arith.constant 0 : index
      %68 = vector.load %arg11[%c0_42, %c0_43] : memref<1x8xf32, #tpu.memory_space<vmem>>, vector<1x8xf32>
      tpu.vector_store %arg11[%c0_42, %c0_43], %67 {strides = array<i32>} : memref<1x8xf32, #tpu.memory_space<vmem>>, vector<1x8xf32>,
    } else {
    }
    %c0 = arith.constant 0 : index
    %c0_2 = arith.constant 0 : index
    %5 = vector.load %arg3[%c0, %c0_2] : memref<16x8xf32, #tpu.memory_space<vmem>>, vector<16x8xf32>
    %c0_i32_3 = arith.constant 0 : i32
    %6 = arith.cmpi eq, %arg1, %c0_i32_3 : i32
    %7 = arith.extui %6 : i1 to i32
    %c0_i32_4 = arith.constant 0 : i32
    %8 = arith.cmpi ne, %7, %c0_i32_4 : i32
    scf.if %8 {
      %c0_32 = arith.constant 0 : index
      %c0_33 = arith.constant 0 : index
      %61 = vector.load %arg11[%c0_32, %c0_33] : memref<1x8xf32, #tpu.memory_space<vmem>>, vector<1x8xf32>
      %cst_34 = arith.constant dense<0.000000e+00> : vector<8xf32>
      %62 = vector.multi_reduction <add>, %5, %cst_34 [0] : vector<16x8xf32> to vector<8xf32>
      %63 = vector.shape_cast %62 : vector<8xf32> to vector<1x8xf32>
      %64 = arith.addf %61, %63 : vector<1x8xf32>
      %c0_35 = arith.constant 0 : index
      %c0_36 = arith.constant 0 : index
      %65 = vector.load %arg11[%c0_35, %c0_36] : memref<1x8xf32, #tpu.memory_space<vmem>>, vector<1x8xf32>
      tpu.vector_store %arg11[%c0_35, %c0_36], %64 {strides = array<i32>} : memref<1x8xf32, #tpu.memory_space<vmem>>, vector<1x8xf32>,
    } else {
    }
    %c0_5 = arith.constant 0 : index
    %c0_6 = arith.constant 0 : index
    %9 = vector.load %arg4[%c0_5, %c0_6] : memref<16x8xf32, #tpu.memory_space<vmem>>, vector<16x8xf32>
    %cst = arith.constant dense<0.000000e+00> : vector<16x16xf32>
    %10 = tpu.matmul %5, %9, %cst {dimension_numbers = #tpu.dot_dimension_numbers<[1], [1], [0], [0], [0, 0, 1, 0], [], []>} : vector<16x8xf32>, vector<16x8xf32>, vector<16x16xf32> -> vector<16x16xf32>
    %c0_7 = arith.constant 0 : index
    %c0_8 = arith.constant 0 : index
    %11 = vector.load %arg5[%c0_7, %c0_8] : memref<16x1xf32, #tpu.memory_space<vmem>>, vector<16x1xf32>
    %c0_9 = arith.constant 0 : index
    %c0_10 = arith.constant 0 : index
    %12 = vector.load %arg6[%c0_9, %c0_10] : memref<1x16xf32, #tpu.memory_space<vmem>>, vector<1x16xf32>
    %13 = vector.broadcast %11 : vector<16x1xf32> to vector<16x16xf32>
    %14 = vector.broadcast %12 : vector<1x16xf32> to vector<16x16xf32>
    %15 = arith.addf %13, %14 : vector<16x16xf32>
    %cst_11 = arith.constant 2.000000e+00 : f32
    %16 = vector.broadcast %cst_11 : f32 to vector<16x16xf32>
    %17 = arith.mulf %16, %10 : vector<16x16xf32>
    %18 = arith.subf %15, %17 : vector<16x16xf32>
    %cst_12 = arith.constant 0.000000e+00 : f32
    %19 = vector.broadcast %cst_12 : f32 to vector<16x16xf32>
    %20 = arith.maximumf %18, %19 : vector<16x16xf32>
    %21 = math.sqrt %20 : vector<16x16xf32>
    %c0_13 = arith.constant 0 : index
    %c0_14 = arith.constant 0 : index
    %22 = vector.load %arg2[%c0_13, %c0_14] : memref<1x1xf32, #tpu.memory_space<vmem>>, vector<1x1xf32>
    %23 = vector.broadcast %22 : vector<1x1xf32> to vector<16x16xf32>
    %24 = arith.mulf %21, %23 : vector<16x16xf32>
    %c16_i32 = arith.constant 16 : i32
    %25 = arith.muli %arg0, %c16_i32 : i32
    %26 = tpu.iota {dimensions = array<i32: 0>} : vector<16x16xi32>
    %27 = vector.broadcast %25 : i32 to vector<16x16xi32>
    %28 = arith.addi %27, %26 : vector<16x16xi32>
    %c16_i32_15 = arith.constant 16 : i32
    %29 = arith.muli %arg1, %c16_i32_15 : i32
    %30 = tpu.iota {dimensions = array<i32: 1>} : vector<16x16xi32>
    %31 = vector.broadcast %29 : i32 to vector<16x16xi32>
    %32 = arith.addi %31, %30 : vector<16x16xi32>
    %33 = arith.cmpi eq, %28, %32 : vector<16x16xi32>
    %cst_16 = arith.constant 0.000000e+00 : f32
    %34 = vector.broadcast %cst_16 : f32 to vector<16x16xf32>
    %35 = arith.select %33, %34, %24 : vector<16x16xi1>, vector<16x16xf32>
    %c0_17 = arith.constant 0 : index
    %c0_18 = arith.constant 0 : index
    %36 = vector.load %arg7[%c0_17, %c0_18] : memref<16x16xi8, #tpu.memory_space<vmem>>, vector<16x16xi8>
    %37 = arith.sitofp %36 : vector<16x16xi8> to vector<16x16xf32>
    %38 = arith.mulf %35, %37 : vector<16x16xf32>
    %39 = vector.shape_cast %38 : vector<16x16xf32> to vector<1x16x16xf32>
    %cst_19 = arith.constant dense<0.000000e+00> : vector<1xf32>
    %40 = vector.multi_reduction <add>, %39, %cst_19 [1, 2] : vector<1x16x16xf32> to vector<1xf32>
    %41 = vector.shape_cast %40 : vector<1xf32> to vector<1x1x1xf32>
    %42 = vector.extract %41[0, 0, 0] : f32 from vector<1x1x1xf32>
    %43 = vector.broadcast %42 : f32 to vector<1x1xf32>
    %c0_20 = arith.constant 0 : index
    %c0_21 = arith.constant 0 : index
    %44 = vector.load %arg8[%c0_20, %c0_21] : memref<1x1xf32, #tpu.memory_space<vmem>>, vector<1x1xf32>
    %45 = arith.addf %44, %43 : vector<1x1xf32>
    %c0_22 = arith.constant 0 : index
    %c0_23 = arith.constant 0 : index
    %46 = vector.load %arg8[%c0_22, %c0_23] : memref<1x1xf32, #tpu.memory_space<vmem>>, vector<1x1xf32>
    tpu.vector_store %arg8[%c0_22, %c0_23], %45 {strides = array<i32>} : memref<1x1xf32, #tpu.memory_space<vmem>>, vector<1x1xf32>,
    %c0_24 = arith.constant 0 : index
    %c0_25 = arith.constant 0 : index
    %47 = vector.load %arg9[%c0_24, %c0_25] : memref<1x1xf32, #tpu.memory_space<vmem>>, vector<1x1xf32>
    %48 = vector.shape_cast %35 : vector<16x16xf32> to vector<1x16x16xf32>
    %cst_26 = arith.constant dense<0.000000e+00> : vector<1xf32>
    %49 = vector.multi_reduction <add>, %48, %cst_26 [1, 2] : vector<1x16x16xf32> to vector<1xf32>
    %50 = vector.shape_cast %49 : vector<1xf32> to vector<1x1x1xf32>
    %51 = vector.extract %50[0, 0, 0] : f32 from vector<1x1x1xf32>
    %52 = vector.broadcast %51 : f32 to vector<1x1xf32>
    %53 = arith.subf %52, %43 : vector<1x1xf32>
    %54 = arith.addf %47, %53 : vector<1x1xf32>
    %c0_27 = arith.constant 0 : index
    %c0_28 = arith.constant 0 : index
    %55 = vector.load %arg9[%c0_27, %c0_28] : memref<1x1xf32, #tpu.memory_space<vmem>>, vector<1x1xf32>
    tpu.vector_store %arg9[%c0_27, %c0_28], %54 {strides = array<i32>} : memref<1x1xf32, #tpu.memory_space<vmem>>, vector<1x1xf32>,
    %c0_i32_29 = arith.constant 0 : i32
    %56 = arith.cmpi eq, %arg0, %c0_i32_29 : i32
    %c0_i32_30 = arith.constant 0 : i32
    %57 = arith.cmpi eq, %arg1, %c0_i32_30 : i32
    %58 = arith.andi %56, %57 : i1
    %59 = arith.extui %58 : i1 to i32
    %c0_i32_31 = arith.constant 0 : i32
    %60 = arith.cmpi ne, %59, %c0_i32_31 : i32
    scf.if %60 {
      %c0_32 = arith.constant 0 : index
      %c0_33 = arith.constant 0 : index
      %61 = vector.load %arg11[%c0_32, %c0_33] : memref<1x8xf32, #tpu.memory_space<vmem>>, vector<1x8xf32>
      %62 = vector.shape_cast %61 : vector<1x8xf32> to vector<1x1x8xf32>
      %cst_34 = arith.constant dense<0.000000e+00> : vector<1xf32>
      %63 = vector.multi_reduction <add>, %62, %cst_34 [1, 2] : vector<1x1x8xf32> to vector<1xf32>
      %64 = vector.shape_cast %63 : vector<1xf32> to vector<1x1x1xf32>
      %65 = vector.extract %64[0, 0, 0] : f32 from vector<1x1x1xf32>
      %66 = vector.broadcast %65 : f32 to vector<1x1xf32>
      %67 = vector.broadcast %66 : vector<1x1xf32> to vector<1x8xf32>
      %68 = arith.divf %61, %67 : vector<1x8xf32>
      %cst_35 = arith.constant 0.000000e+00 : f32
      %69 = vector.broadcast %cst_35 : f32 to vector<1x8xf32>
      %70 = arith.cmpf ogt, %68, %69 : vector<1x8xf32>
      %cst_36 = arith.constant 1.000000e+00 : f32
      %71 = vector.broadcast %cst_36 : f32 to vector<1x8xf32>
      %72 = arith.select %70, %68, %71 : vector<1x8xi1>, vector<1x8xf32>
      %cst_37 = arith.constant 0.000000e+00 : f32
      %73 = vector.broadcast %cst_37 : f32 to vector<1x8xf32>
      %74 = arith.cmpf ogt, %68, %73 : vector<1x8xf32>
      %75 = math.log %72 : vector<1x8xf32>
      %76 = arith.mulf %68, %75 : vector<1x8xf32>
      %cst_38 = arith.constant 0.000000e+00 : f32
      %77 = vector.broadcast %cst_38 : f32 to vector<1x8xf32>
      %78 = arith.select %74, %76, %77 : vector<1x8xi1>, vector<1x8xf32>
      %79 = vector.shape_cast %78 : vector<1x8xf32> to vector<1x1x8xf32>
      %cst_39 = arith.constant dense<0.000000e+00> : vector<1xf32>
      %80 = vector.multi_reduction <add>, %79, %cst_39 [1, 2] : vector<1x1x8xf32> to vector<1xf32>
      %81 = vector.shape_cast %80 : vector<1xf32> to vector<1x1x1xf32>
      %82 = vector.extract %81[0, 0, 0] : f32 from vector<1x1x1xf32>
      %83 = vector.broadcast %82 : f32 to vector<1x1xf32>
      %cst_40 = arith.constant 2.07944155 : f32
      %84 = vector.broadcast %cst_40 : f32 to vector<1x1xf32>
      %85 = arith.addf %84, %83 : vector<1x1xf32>
      %c0_41 = arith.constant 0 : index
      %c0_42 = arith.constant 0 : index
      %86 = vector.load %arg10[%c0_41, %c0_42] : memref<1x1xf32, #tpu.memory_space<vmem>>, vector<1x1xf32>
      tpu.vector_store %arg10[%c0_41, %c0_42], %85 {strides = array<i32>} : memref<1x1xf32, #tpu.memory_space<vmem>>, vector<1x1xf32>,
    } else {
    }
    return
  }
  func.func @transform_0(%arg0: i32, %arg1: i32) -> (i32, i32) {
    %c0_i32 = arith.constant 0 : i32
    %c0_i32_0 = arith.constant 0 : i32
    %c0_i32_1 = arith.constant 0 : i32
    return %c0_i32, %c0_i32_0 : i32, i32
  }
  func.func @transform_1(%arg0: i32, %arg1: i32) -> (i32, i32) {
    %c0_i32 = arith.constant 0 : i32
    %c0_i32_0 = arith.constant 0 : i32
    return %arg0, %c0_i32 : i32, i32
  }
  func.func @transform_2(%arg0: i32, %arg1: i32) -> (i32, i32) {
    %c0_i32 = arith.constant 0 : i32
    %c0_i32_0 = arith.constant 0 : i32
    return %arg1, %c0_i32 : i32, i32
  }
  func.func @transform_3(%arg0: i32, %arg1: i32) -> (i32, i32) {
    %c0_i32 = arith.constant 0 : i32
    %c0_i32_0 = arith.constant 0 : i32
    return %arg0, %c0_i32 : i32, i32
  }
  func.func @transform_4(%arg0: i32, %arg1: i32) -> (i32, i32) {
    %c0_i32 = arith.constant 0 : i32
    %c0_i32_0 = arith.constant 0 : i32
    return %c0_i32, %arg1 : i32, i32
  }
  func.func @transform_5(%arg0: i32, %arg1: i32) -> (i32, i32) {
    %c0_i32 = arith.constant 0 : i32
    return %arg0, %arg1 : i32, i32
  }
  func.func @transform_6(%arg0: i32, %arg1: i32) -> (i32, i32) {
    %c0_i32 = arith.constant 0 : i32
    %c0_i32_0 = arith.constant 0 : i32
    %c0_i32_1 = arith.constant 0 : i32
    return %c0_i32, %c0_i32_0 : i32, i32
  }
  func.func @transform_7(%arg0: i32, %arg1: i32) -> (i32, i32) {
    %c0_i32 = arith.constant 0 : i32
    %c0_i32_0 = arith.constant 0 : i32
    %c0_i32_1 = arith.constant 0 : i32
    return %c0_i32, %c0_i32_0 : i32, i32
  }
  func.func @transform_8(%arg0: i32, %arg1: i32) -> (i32, i32) {
    %c0_i32 = arith.constant 0 : i32
    %c0_i32_0 = arith.constant 0 : i32
    %c0_i32_1 = arith.constant 0 : i32
    return %c0_i32, %c0_i32_0 : i32, i32
  }
}

</mosaic_0001>

<bundles_post_ra>
// kernel: tpu_custom_call.1
= control target key start
LH: loop header
LB: loop body
LE: loop exit
PB: predicated region body
PF: predicated region fallthrough
CT: control target
= control target key end

     0   :  { %s602_s0 = inlined_call_operand.<no memory space> [shape: f32[1,1], index: 0, kind: input, shape index: {}]   ;;  %s603_s1 = inlined_call_operand.vmem [shape: f32[16,8], index: 1, kind: input, shape index: {}]   ;;  %s604_s2 = inlined_call_operand.vmem [shape: f32[16,8], index: 2, kind: input, shape index: {}]   ;;  %s605_s3 = inlined_call_operand.vmem [shape: f32[16,1], index: 3, kind: input, shape index: {}]   ;;  %s606_s4 = inlined_call_operand.vmem [shape: f32[1,16], index: 4, kind: input, shape index: {}]   ;;  %s607_s5 = inlined_call_operand.vmem [shape: s8[16,16], index: 5, kind: input, shape index: {}]   ;;  %s608_s6 = inlined_call_operand.hbm [shape: f32[1,1], index: 6, kind: output, shape index: {0}]   ;;  %s609_s7 = inlined_call_operand.hbm [shape: f32[1,1], index: 7, kind: output, shape index: {1}]   ;;  %s610_s8 = inlined_call_operand.hbm [shape: f32[1,1], index: 8, kind: output, shape index: {2}]  }
   0x1   :  { %v14_v0 = vstv %s602_s0 }
   0x2   :  { %15 = vst [vmem:[#allocation3] sm:$0x1] %v14_v0 }
   0x3   :  { %16 = vsyncpa [#allocation5], 0  ;;  %vm48_vm0 = vcmask 64512   ;;  %v61_v1 = vld [vmem:[%s604_s2] sm:$0xff]  ;;  %v62_v2 = vld [vmem:[%s604_s2 + $0x8] sm:$0xff]  ;;  %v460_v8 = vmov 0  }
   0x4   :  { %v42_v3 = vld [vmem:[%s603_s1] sm:$0xff]  ;;  %v361_v4 = vpack.c.bf16 %v62_v2, %v61_v1  ;;  %vm524_vm1 = vmpackc.low %vm48_vm0, %vm48_vm0  ;;  %v43_v6 = vld [vmem:[%s603_s1 + $0x8] sm:$0xff]  ;;  %380 = vset.pattern.permute.xlu0 %v460_v8  ;;  %381 = vset.pattern.permute.xlu1 %v460_v8 }
   0x5   :  { %v49_v7 = vsel %vm48_vm0, %v42_v3, 0.0  ;;  %358 = vmatprep.mubr.msk.f32.mxu0 %vm48_vm0, %v42_v3  ;;  %v151_v9 = vld [vmem:[%s605_s3] sm:$0xff]  ;;  %v50_v10 = vsel %vm48_vm0, %v43_v6, 0.0  ;;  %v152_v13 = vld [vmem:[%s605_s3 + $0x8] sm:$0xff] }
   0x6   :  { %156 = vperm.xlu0 %380, %v151_v9   ;;  %363 = vmatprep.subr.msk.bf16.mxu0 %vm524_vm1, %v361_v4  ;;  %v51_v12 = vadd.f32 %v50_v10, %v49_v7 }
   0x9   :  { %v345_v11 = vld [vmem:[#allocation3] ss:$0 sm:$0xff] }
   0xa   :  { %199 = vperm.xlu1 %381, %v345_v11  }
   0xb   :  { %17 = vsyncpa [#allocation7], 0  ;;  %366 = vmatpush3.bf16.xpose.msk.msra.mxu0 %vm524_vm1, %v361_v4  ;;  %161 = vperm.xlu0 %380, %v152_v13   ;;  %v52_v14 = vrot.slane %v51_v12, 4  ;;  %vm40_vm2 = vcmask 57344   ;;  %v461_v19 = vmov 0.0   ;;  %v205_v36 = vlaneseq  ;;  %s462_s20 = smov [#allocation6]  }
   0xc   :  { %41 = vst.msk [vmem:[#allocation2] sm:$0x1] %vm40_vm2, %v461_v19  ;;  %v344_v24 = vld [vmem:[%s606_s4] ss:$0 sm:$0xff]  ;;  %vm228_vm9 = vcmask 130048   ;;  %vm36_vm10 = vcmask 0  }
   0xd   :  { %v53_v15 = vadd.f32 %v52_v14, %v51_v12  ;;  %v206_v37 = vshrl.u32 %v205_v36, 7  ;;  %v213_v38 = vand.u32 127, %v205_v36  ;;  %v347_v39 = vld [vmem:[%s607_s5] sm:$0xf]   ;;  %37 = vst.msk [vmem:[#allocation4] sm:$0x1] %vm36_vm10, %v461_v19 }
   0xe   :  { %v349_v42 = vunpack.c.1.s8 %v347_v39  ;;  %v348_v45 = vunpack.c.0.s8 %v347_v39  ;;  %38 = vst.msk [vmem:[#allocation6] sm:$0x1] %vm36_vm10, %v461_v19  ;;  %39 = vst.msk [vmem:[#allocation8] sm:$0x1] %vm36_vm10, %v461_v19  ;;  %s315_s21 = sshll.u32 %s462_s20, 4  ;;  %s463_s22 = smov [#allocation4]   ;;  %s316_s21 = int_to_ptr.vmem [resolvable:$true] %s315_s21 }
   0xf   :  { %v54_v16 = vrot.slane %v53_v15, 2  ;;  %v207_v40 = vadd.s32 8, %v206_v37  ;;  %vm216_vm3 = vcmp.eq.s32.totalorder %v206_v37, %v213_v38  ;;  %s305_s23 = sshll.u32 %s463_s22, 4  ;;  %s390_s24 = scalar_lea.vmem %s316_s21, 16  ;;  %s306_s23 = int_to_ptr.vmem [resolvable:$true] %s305_s23 }
  0x10   :  { %v225_v53 = vcvt.s32.f32 %v349_v42  ;;  %v224_v56 = vcvt.s32.f32 %v348_v45  ;;  %p391_p0 = scmp.ne.s32.totalorder %s316_s21, %s390_s24  ;;  %s394_s25 = scalar_lea.vmem %s316_s21, 32 }
  0x11   :  { %v55_v17 = vadd.f32 %v54_v16, %v53_v15  ;;  %vm217_vm5 = vcmp.eq.s32.totalorder %v207_v40, %v213_v38  ;;  %p395_p1 = scmp.lt.s32.totalorder %s316_s21, %s316_s21  ;;  %p396_p2 = scmp.lt.s32.totalorder %s394_s25, %s390_s24 }
  0x12   :  { %359 = vmatmul.mubr.msk.f32.vlgmr.msra.gmra.mrb[0].mxu0 %vm48_vm0, %v43_v6 }
  0x13   :  { %v56_v18 = vrot.slane %v55_v17, 1  ;;  %v47_v21 = vld [vmem:[#allocation2] sm:$0x1]  ;;  %p397_p3 = por %p396_p2, %p395_p1 }
  0x15   :  { %v57_v20 = vadd.f32 %v56_v18, %v55_v17  ;;  %p398_p4 = pnand %p397_p3, %p391_p0 }
  0x17   :  { %v58_v22 = vadd.f32 %v57_v20, %v47_v21 }
  0x19   :  { %60 = vst.msk [vmem:[#allocation2] sm:$0x1] %vm40_vm2, %v58_v22 }
  0x20   :  { %v265_v2 = vld [vmem:[#allocation2] sm:$0x1] }
  0x21   :  { %v267_v5 = vsel %vm40_vm2, %v265_v2, 0.0 }
  0x85   :  { %v157_v23 = vpop.permute.xlu0 %156 }
  0x86   :  { %v170_v30 = vadd.f32 %v344_v24, %v157_v23 }
  0x89   :  { %v200_v46 = vpop.permute.xlu1 %199 }
  0x8a   :  { %v162_v25 = vpop.permute.xlu0 %161 }
  0x8b   :  { %v171_v27 = vadd.f32 %v344_v24, %v162_v25 }
  0xe5   :  { %v360_v26 = vpop.f32.mrb[0].mxu0 }
  0xe6   :  { %v173_v28 = vmul.f32 2.0, %v360_v26  ;;  %v142_v29 = vpop.f32.mrb[1].mxu0 }
  0xe7   :  { %v172_v31 = vmul.f32 2.0, %v142_v29 }
  0xe8   :  { %v175_v32 = vsub.f32 %v171_v27, %v173_v28  ;;  %v242_v27 = vld [vmem:[#allocation4] sm:$0x1] }
  0xe9   :  { %v174_v33 = vsub.f32 %v170_v30, %v172_v31  ;;  %v246_v30 = vld [vmem:[#allocation6] sm:$0x1] }
  0xea   :  { %v177_v34 = vmax.f32 %v175_v32, 0.0 }
  0xeb   :  { %v176_v35 = vmax.f32 %v174_v33, 0.0 }
  0xec   :  { %382 = vrsqrt.f32 %v177_v34  ;;  %vm187_vm4 = vcmp.eq.f32.partialorder %v177_v34, inf  ;;  %v190_v48 = vand.u32 2147483648, %v177_v34  ;;  %vm189_vm7 = vcmp.eq.f32.partialorder %v177_v34, 0.0 }
  0xed   :  { %384 = vrsqrt.f32 %v176_v35  ;;  %vm180_vm6 = vcmp.eq.f32.partialorder %v176_v35, inf  ;;  %v183_v49 = vand.u32 2147483648, %v176_v35  ;;  %vm182_vm8 = vcmp.eq.f32.partialorder %v176_v35, 0.0 }
  0xf6   :  { %v383_v41 = vpop.eup %382 }
  0xf7   :  { %v385_v43 = vpop.eup %384  ;;  %v186_v44 = vmul.f32 %v383_v41, %v177_v34 }
  0xf8   :  { %v179_v47 = vmul.f32 %v385_v43, %v176_v35 }
  0xf9   :  { %v188_v50 = vsel %vm187_vm4, %v177_v34, %v186_v44 }
  0xfa   :  { %v181_v51 = vsel %vm180_vm6, %v176_v35, %v179_v47  ;;  %v191_v52 = vsel %vm189_vm7, %v190_v48, %v188_v50 }
  0xfb   :  { %v184_v54 = vsel %vm182_vm8, %v183_v49, %v181_v51  ;;  %v203_v55 = vmul.f32 %v200_v46, %v191_v52 }
  0xfc   :  { %v202_v57 = vmul.f32 %v200_v46, %v184_v54 }
  0xfd   :  { %v219_v58 = vsel %vm217_vm5, 0.0, %v203_v55 }
  0xfe   :  { %v218_v59 = vsel %vm216_vm3, 0.0, %v202_v57  ;;  %v248_v60 = vsel %vm228_vm9, %v219_v58, 0.0  ;;  %v227_v61 = vmul.f32 %v225_v53, %v219_v58 }
  0xff   :  { %v247_v62 = vsel %vm228_vm9, %v218_v59, 0.0  ;;  %v226_v63 = vmul.f32 %v224_v56, %v218_v59 }
 0x100   :  { %v249_v0 = vadd.f32 %v248_v60, %v247_v62  ;;  %v230_v1 = vsel %vm228_vm9, %v227_v61, 0.0 }
 0x101   :  { %v229_v3 = vsel %vm228_vm9, %v226_v63, 0.0 }
 0x102   :  { %250 = vadd.xlane.f32.xlu0 %v249_v0  ;;  %v231_v4 = vadd.f32 %v230_v1, %v229_v3 }
 0x104   :  { %232 = vadd.xlane.f32.xlu1 %v231_v4 }
 0x106   :  { %268 = vadd.xlane.f32.xlu0 %v267_v5 }
 0x18f   :  { %v251_v6 = vpop.xlane.xlu0 %250 }
 0x190   :  { %v252_v7 = vrot.slane %v251_v6, 4 }
 0x191   :  { %v233_v8 = vpop.xlane.xlu1 %232 }
 0x192   :  { %v253_v9 = vadd.f32 %v252_v7, %v251_v6  ;;  %v234_v10 = vrot.slane %v233_v8, 4 }
 0x193   :  { %v269_v11 = vpop.xlane.xlu0 %268 }
 0x194   :  { %v254_v12 = vrot.slane %v253_v9, 2  ;;  %v235_v13 = vadd.f32 %v234_v10, %v233_v8  ;;  %v270_v14 = vrot.slane %v269_v11, 4 }
 0x196   :  { %v236_v15 = vrot.slane %v235_v13, 2  ;;  %v271_v16 = vadd.f32 %v270_v14, %v269_v11  ;;  %v255_v17 = vadd.f32 %v254_v12, %v253_v9 }
 0x198   :  { %v272_v18 = vrot.slane %v271_v16, 2  ;;  %v237_v20 = vadd.f32 %v236_v15, %v235_v13  ;;  %v256_v21 = vrot.slane %v255_v17, 1 }
 0x19a   :  { %v273_v22 = vadd.f32 %v272_v18, %v271_v16  ;;  %v238_v23 = vrot.slane %v237_v20, 1  ;;  %v257_v19 = vadd.f32 %v256_v21, %v255_v17 }
 0x19c   :  { %v239_v24 = vadd.f32 %v238_v23, %v237_v20  ;;  %v274_v25 = vrot.slane %v273_v22, 1 }
 0x19e   :  { %367 = vpush %v239_v24  ;;  %v275_v26 = vadd.f32 %v274_v25, %v273_v22 }
 0x19f   :  { %369 = vpush %v257_v19 }
 0x1a0   :  { %371 = vpush %v275_v26 }
 0x1cf   :  { %s368_s4 = spop %367 }
 0x1d0   :  { %v241_v28 = vstv %s368_s4  ;;  %s370_s5 = spop %369 }
 0x1d1   :  { %v243_v29 = vadd.f32 %v242_v27, %v241_v28  ;;  %v259_v31 = vstv %s370_s5  ;;  %s372_s19 = spop %371 }
 0x1d2   :  { %v260_v32 = vsub.f32 %v259_v31, %v241_v28  ;;  %v277_v33 = vstv %s372_s19 }
 0x1d3   :  { %245 = vst.msk [vmem:[#allocation4] sm:$0x1] %vm36_vm10, %v243_v29  ;;  %386 = vrcp.f32 %v277_v33 }
 0x1d4   :  { %v261_v34 = vadd.f32 %v260_v32, %v246_v30 }
 0x1d6   :  { %262 = vst.msk [vmem:[#allocation6] sm:$0x1] %vm36_vm10, %v261_v34 }
 0x1dd   :  { %v387_v35 = vpop.eup %386 }
 0x1de   :  { %v279_v36 = vmul.f32 %v387_v35, %v265_v2 }
 0x1e0   :  { %vm280_vm11 = vcmp.gt.f32.partialorder %v279_v36, 0.0 }
 0x1e1   :  { %v281_v37 = vsel %vm280_vm11, %v279_v36, 1.0 }
 0x1e2   :  { %388 = vlog2.f32 %v281_v37 }
 0x1ec   :  { %v389_v38 = vpop.eup %388 }
 0x1ed   :  { %v283_v39 = vmul.f32 0.6931472, %v389_v38 }
 0x1ef   :  { %v284_v40 = vmul.f32 %v283_v39, %v279_v36 }
 0x1f1   :  { %v285_v41 = vsel %vm280_vm11, %v284_v40, 0.0 }
 0x1f2   :  { %v286_v42 = vsel %vm40_vm2, %v285_v41, 0.0 }
 0x1f3   :  { %287 = vadd.xlane.f32.xlu1 %v286_v42 }
 0x1f4   :  { %401 = shalt.err (!%p398_p4)
}
 0x1f5   :  { %s402_s28 = scalar_lea.hbm %s609_s7, 16 }
 0x1f6   :  { %p403_p5 = scmp.ne.s32.totalorder %s609_s7, %s402_s28  ;;  %p406_p6 = scmp.lt.u32.totalorder %s402_s28, %s609_s7 }
 0x1f8   :  { %p408_p7 = pnand %p406_p6, %p403_p5 }
 0x1fa   :  { %411 = shalt.err (!%p408_p7)
}
 0x1fb   :  { %318 = dma.vmem_to_hbm [thread:$0]  %s316_s21, 16, %s609_s7, [#allocation7]  }
 0x1fc   :  { %s412_s0 = scalar_lea.vmem %s306_s23, 16  ;;  %s416_s13 = scalar_lea.vmem %s306_s23, 32 }
 0x1fd   :  { %p413_p8 = scmp.ne.s32.totalorder %s306_s23, %s412_s0  ;;  %p417_p9 = scmp.lt.s32.totalorder %s306_s23, %s306_s23 }
 0x1fe   :  { %p418_p10 = scmp.lt.s32.totalorder %s416_s13, %s412_s0 }
 0x200   :  { %p419_p11 = por %p418_p10, %p417_p9 }
 0x202   :  { %p420_p12 = pnand %p419_p11, %p413_p8 }
 0x204   :  { %423 = shalt.err (!%p420_p12)
}
 0x205   :  { %s424_s1 = scalar_lea.hbm %s608_s6, 16 }
 0x206   :  { %p425_p13 = scmp.ne.s32.totalorder %s608_s6, %s424_s1  ;;  %p428_p0 = scmp.lt.u32.totalorder %s424_s1, %s608_s6 }
 0x208   :  { %p430_p1 = pnand %p428_p0, %p425_p13 }
 0x20a   :  { %433 = shalt.err (!%p430_p1)
}
 0x20b   :  { %308 = dma.vmem_to_hbm [thread:$0]  %s306_s23, 16, %s608_s6, [#allocation5]  }
 0x20c   :  { %s464_s4 = smov [#allocation8]  }
 0x20d   :  { %s325_s5 = sshll.u32 %s464_s4, 4  ;;  %s326_s5 = int_to_ptr.vmem [resolvable:$true] %s325_s5 }
 0x20e   :  { %s434_s20 = scalar_lea.vmem %s326_s5, 16  ;;  %s438_s21 = scalar_lea.vmem %s326_s5, 32 }
 0x20f   :  { %p435_p2 = scmp.ne.s32.totalorder %s326_s5, %s434_s20  ;;  %p439_p3 = scmp.lt.s32.totalorder %s326_s5, %s326_s5 }
 0x210   :  { %p440_p4 = scmp.lt.s32.totalorder %s438_s21, %s434_s20 }
 0x212   :  { %p441_p5 = por %p440_p4, %p439_p3 }
 0x214   :  { %p442_p6 = pnand %p441_p5, %p435_p2 }
 0x280   :  { %v288_v43 = vpop.xlane.xlu1 %287 }
 0x281   :  { %v289_v44 = vrot.slane %v288_v43, 4 }
 0x283   :  { %v290_v45 = vadd.f32 %v289_v44, %v288_v43 }
 0x285   :  { %v291_v46 = vrot.slane %v290_v45, 2 }
 0x287   :  { %v292_v47 = vadd.f32 %v291_v46, %v290_v45 }
 0x289   :  { %v293_v48 = vrot.slane %v292_v47, 1 }
 0x28b   :  { %v294_v49 = vadd.f32 %v293_v48, %v292_v47 }
 0x28d   :  { %373 = vpush %v294_v49 }
 0x2be   :  { %s374_s19 = spop %373 }
 0x2bf   :  { %v296_v50 = vstv %s374_s19 }
 0x2c0   :  { %v297_v51 = vadd.f32 2.0794415, %v296_v50 }
 0x2c2   :  { %298 = vst.msk [vmem:[#allocation8] sm:$0x1] %vm36_vm10, %v297_v51 }
 0x2c3   :  { %445 = shalt.err (!%p442_p6)
}
 0x2c4   :  { %s446_s23 = scalar_lea.hbm %s610_s8, 16 }
 0x2c5   :  { %p447_p7 = scmp.ne.s32.totalorder %s610_s8, %s446_s23  ;;  %p450_p8 = scmp.lt.u32.totalorder %s446_s23, %s610_s8 }
 0x2c7   :  { %p452_p9 = pnand %p450_p8, %p447_p7 }
 0x2c9   :  { %455 = shalt.err (!%p452_p9)
}
 0x2ca   :  { %328 = dma.vmem_to_hbm [thread:$0]  %s326_s5, 16, %s610_s8, [#allocation7]  }
 0x2cb   :  { %456 = dma.done.wait [#allocation5], 16  }
 0x2cc   :  { %457 = vsyncadd [#allocation5], 4294967280 }
 0x2cd   :  { %458 = dma.done.wait [#allocation7], 32  }
 0x2ce   :  { %459 = vsyncadd [#allocation7], 4294967264 }
 0x2cf   :  { %338 = vsyncpa [#allocation5], 1 }
 0x2d0   :  { %339 = vsyncpa [#allocation7], 1 }

</bundles_post_ra>
